<compile_context>
chip_gen: v7x
topology: tpu7x:2x2x1
jax: 0.10.0
libtpu: 0.0.40
codegen_flags: <defaults>
</compile_context>

<pallas_src>
import functools

import jax
import jax.numpy as jnp
from jax.experimental import pallas as pl
from jax.experimental.pallas import tpu as pltpu


def _make_kernel(smooth_ratio: float, num_classes: int, n_valid: int,
                 tile_n: int):
    v = smooth_ratio / num_classes          # off-class weight
    on_minus_v = 1.0 - smooth_ratio         # on_value - v
    inv_n = 1.0 / n_valid

    def kernel(label_ref, x_ref, out_ref):
        i = pl.program_id(0)

        x = x_ref[...].astype(jnp.float32)                       # (TILE_N, C)

        # Numerically stable logsumexp pieces over the class (lane) axis.
        m = jnp.max(x, axis=-1, keepdims=True)                   # (TILE_N, 1)
        z = x - m
        lse = jnp.log(jnp.sum(jnp.exp(z), axis=-1, keepdims=True))
        sum_z = jnp.sum(z, axis=-1, keepdims=True)               # (TILE_N, 1)

        # z at the label column, without building a dense one_hot.
        labels = label_ref[...]                                  # (TILE_N, 1)
        col = jax.lax.broadcasted_iota(jnp.int32, x.shape, 1)
        z_lab = jnp.sum(jnp.where(col == labels, z, 0.0),
                        axis=-1, keepdims=True)                  # (TILE_N, 1)

        # row_loss = -sum_c logp * w  with the smoothed weights folded in.
        row_loss = -(v * (sum_z - jnp.float32(num_classes) * lse)
                     + on_minus_v * (z_lab - lse))               # (TILE_N, 1)

        # Mask padded rows beyond the real batch.
        row = jax.lax.broadcasted_iota(jnp.int32, (tile_n, 1), 0) + i * tile_n
        row_loss = jnp.where(row < n_valid, row_loss, 0.0)

        partial = jnp.sum(row_loss) * jnp.float32(inv_n)         # scalar

        # Lane-dense unmasked store of this tile's partial (position [0,0,0],
        # zeros elsewhere); the wrapper sums all blocks.
        flat = (jax.lax.broadcasted_iota(jnp.int32, (1, 8, 128), 1) * 128
                + jax.lax.broadcasted_iota(jnp.int32, (1, 8, 128), 2))
        out_ref[...] = jnp.where(flat == 0, partial, 0.0)

    return kernel


@functools.partial(jax.jit, static_argnames=("smooth_ratio", "tile_n"))
def label_smooth_ce_loss(x, label, smooth_ratio: float, tile_n: int = None):
    """x: (N, C) float (f32/bf16), label: (N,) int -> scalar float32 loss."""
    n, c = x.shape

    if tile_n is None:
        # Target ~2 MiB per logits tile (double-buffered input stays well under
        # the default scoped-VMEM limit on v5e/v6e/v7x), multiple of 8 rows.
        bytes_per_row = c * jnp.dtype(x.dtype).itemsize
        tile_n = (2 * 1024 * 1024) // max(bytes_per_row, 1)
        tile_n = max(8, min(512, (tile_n // 8) * 8))

    num_tiles = pl.cdiv(n, tile_n)
    n_pad = num_tiles * tile_n

    label2d = label.astype(jnp.int32).reshape(n, 1)
    if n_pad != n:
        x = jnp.pad(x, ((0, n_pad - n), (0, 0)))
        label2d = jnp.pad(label2d, ((0, n_pad - n), (0, 0)))

    kernel = _make_kernel(smooth_ratio, c, n, tile_n)

    partials = pl.pallas_call(
        kernel,
        out_shape=jax.ShapeDtypeStruct((num_tiles, 8, 128), jnp.float32),
        grid_spec=pltpu.PrefetchScalarGridSpec(
            num_scalar_prefetch=0,
            grid=(num_tiles,),
            in_specs=[
                pl.BlockSpec((tile_n, 1), lambda i: (i, 0)),   # labels
                pl.BlockSpec((tile_n, c), lambda i: (i, 0)),   # logits
            ],
            out_specs=pl.BlockSpec((1, 8, 128), lambda i: (i, 0, 0)),
        ),
        compiler_params=pltpu.CompilerParams(
            dimension_semantics=("parallel",)),
    )(label2d, x)

    return jnp.sum(partials)


def _reference(x, label, smooth_ratio):
    # Pure-JAX reference mirroring the PyTorch forward.
    n, c = x.shape
    v = smooth_ratio / c
    logp = jax.nn.log_softmax(x.astype(jnp.float32), axis=1)
    one_hot = jnp.full((n, c), v, dtype=jnp.float32)
    one_hot = one_hot.at[jnp.arange(n), label].set(1.0 - smooth_ratio + v)
    return -jnp.sum(logp * one_hot) / n


if __name__ == "__main__":
    key = jax.random.PRNGKey(0)
    k1, k2, k3, k4 = jax.random.split(key, 4)
    smooth_ratio = 0.1

    # Test 1: small f32, batch a multiple of the tile.
    N, C = 8, 32
    x = jax.random.normal(k1, (N, C), dtype=jnp.float32)
    label = jax.random.randint(k2, (N,), 0, C, dtype=jnp.int32)
    loss = jax.block_until_ready(label_smooth_ce_loss(x, label, smooth_ratio))
    ref = _reference(x, label, smooth_ratio)
    assert jnp.allclose(loss, ref, rtol=1e-5, atol=1e-5), (loss, ref)

    # Test 2: non-multiple batch with an explicit small tile (exercises the
    # grid, pipelining, and row masking for the padded tail).
    N2, C2 = 50, 160
    x2 = jax.random.normal(k3, (N2, C2), dtype=jnp.float32)
    label2 = jax.random.randint(k4, (N2,), 0, C2, dtype=jnp.int32)
    loss2 = jax.block_until_ready(
        label_smooth_ce_loss(x2, label2, smooth_ratio, tile_n=16))
    ref2 = _reference(x2, label2, smooth_ratio)
    assert jnp.allclose(loss2, ref2, rtol=1e-5, atol=1e-5), (loss2, ref2)

    # Test 3: bf16 logits accepted directly (halved HBM bytes); looser tol.
    x3 = x2.astype(jnp.bfloat16)
    loss3 = jax.block_until_ready(
        label_smooth_ce_loss(x3, label2, smooth_ratio, tile_n=16))
    ref3 = _reference(x3, label2, smooth_ratio)
    assert jnp.allclose(loss3, ref3, rtol=2e-2, atol=2e-2), (loss3, ref3)

    print("KERNEL_OK")
</pallas_src>

<mosaic_0001>
module attributes {stable_mosaic.version = 11 : i64} {
  func.func @kernel(%arg0: i32, %arg1: memref<512x1xi32, #tpu.memory_space<vmem>>, %arg2: memref<512x32xf32, #tpu.memory_space<vmem>>, %arg3: memref<1x8x128xf32, #tpu.memory_space<vmem>>) attributes {dimension_semantics = [#tpu.dimension_semantics<parallel>], iteration_bounds = array<i64: 1>, scalar_prefetch = 0 : i64, scratch_operands = 0 : i64, tpu.core_type = #tpu.core_type<tc>, window_params = [{transform_indices = @transform_0, window_bounds = array<i64: 512, 1>}, {transform_indices = @transform_1, window_bounds = array<i64: 512, 32>}, {transform_indices = @transform_2, window_bounds = array<i64: 1, 8, 128>}]} {
    %c0 = arith.constant 0 : index
    %c0_0 = arith.constant 0 : index
    %0 = vector.load %arg2[%c0, %c0_0] : memref<512x32xf32, #tpu.memory_space<vmem>>, vector<512x32xf32>
    %cst = arith.constant dense<0xFF800000> : vector<512xf32>
    %1 = vector.multi_reduction <maximumf>, %0, %cst [1] : vector<512x32xf32> to vector<512xf32>
    %2 = vector.shape_cast %1 : vector<512xf32> to vector<512x1xf32>
    %3 = vector.broadcast %2 : vector<512x1xf32> to vector<512x32xf32>
    %4 = arith.subf %0, %3 : vector<512x32xf32>
    %5 = math.exp %4 : vector<512x32xf32>
    %cst_1 = arith.constant dense<0.000000e+00> : vector<512xf32>
    %6 = vector.multi_reduction <add>, %5, %cst_1 [1] : vector<512x32xf32> to vector<512xf32>
    %7 = vector.shape_cast %6 : vector<512xf32> to vector<512x1xf32>
    %8 = math.log %7 : vector<512x1xf32>
    %cst_2 = arith.constant dense<0.000000e+00> : vector<512xf32>
    %9 = vector.multi_reduction <add>, %4, %cst_2 [1] : vector<512x32xf32> to vector<512xf32>
    %10 = vector.shape_cast %9 : vector<512xf32> to vector<512x1xf32>
    %c0_3 = arith.constant 0 : index
    %c0_4 = arith.constant 0 : index
    %11 = vector.load %arg1[%c0_3, %c0_4] : memref<512x1xi32, #tpu.memory_space<vmem>>, vector<512x1xi32>
    %12 = tpu.iota {dimensions = array<i32: 1>} : vector<512x32xi32>
    %13 = vector.broadcast %11 : vector<512x1xi32> to vector<512x32xi32>
    %14 = arith.cmpi eq, %12, %13 : vector<512x32xi32>
    %cst_5 = arith.constant 0.000000e+00 : f32
    %15 = vector.broadcast %cst_5 : f32 to vector<512x32xf32>
    %16 = arith.select %14, %4, %15 : vector<512x32xi1>, vector<512x32xf32>
    %cst_6 = arith.constant dense<0.000000e+00> : vector<512xf32>
    %17 = vector.multi_reduction <add>, %16, %cst_6 [1] : vector<512x32xf32> to vector<512xf32>
    %18 = vector.shape_cast %17 : vector<512xf32> to vector<512x1xf32>
    %cst_7 = arith.constant 3.200000e+01 : f32
    %19 = vector.broadcast %cst_7 : f32 to vector<512x1xf32>
    %20 = arith.mulf %19, %8 : vector<512x1xf32>
    %21 = arith.subf %10, %20 : vector<512x1xf32>
    %cst_8 = arith.constant 3.125000e-03 : f32
    %22 = vector.broadcast %cst_8 : f32 to vector<512x1xf32>
    %23 = arith.mulf %22, %21 : vector<512x1xf32>
    %24 = arith.subf %18, %8 : vector<512x1xf32>
    %cst_9 = arith.constant 0.899999976 : f32
    %25 = vector.broadcast %cst_9 : f32 to vector<512x1xf32>
    %26 = arith.mulf %25, %24 : vector<512x1xf32>
    %27 = arith.addf %23, %26 : vector<512x1xf32>
    %cst_10 = arith.constant 0.000000e+00 : f32
    %28 = vector.broadcast %cst_10 : f32 to vector<512x1xf32>
    %29 = arith.subf %28, %27 : vector<512x1xf32>
    %30 = tpu.iota {dimensions = array<i32: 0>} : vector<512x1xi32>
    %c512_i32 = arith.constant 512 : i32
    %31 = arith.muli %arg0, %c512_i32 : i32
    %32 = vector.broadcast %31 : i32 to vector<512x1xi32>
    %33 = arith.addi %30, %32 : vector<512x1xi32>
    %c8_i32 = arith.constant 8 : i32
    %34 = vector.broadcast %c8_i32 : i32 to vector<512x1xi32>
    %35 = arith.cmpi slt, %33, %34 : vector<512x1xi32>
    %cst_11 = arith.constant 0.000000e+00 : f32
    %36 = vector.broadcast %cst_11 : f32 to vector<512x1xf32>
    %37 = arith.select %35, %29, %36 : vector<512x1xi1>, vector<512x1xf32>
    %38 = vector.shape_cast %37 : vector<512x1xf32> to vector<1x512x1xf32>
    %cst_12 = arith.constant dense<0.000000e+00> : vector<1xf32>
    %39 = vector.multi_reduction <add>, %38, %cst_12 [1, 2] : vector<1x512x1xf32> to vector<1xf32>
    %40 = vector.shape_cast %39 : vector<1xf32> to vector<1x1x1xf32>
    %41 = vector.extract %40[0, 0, 0] : f32 from vector<1x1x1xf32>
    %cst_13 = arith.constant 1.250000e-01 : f32
    %42 = arith.mulf %41, %cst_13 : f32
    %43 = tpu.iota {dimensions = array<i32: 1>} : vector<1x8x128xi32>
    %c128_i32 = arith.constant 128 : i32
    %44 = vector.broadcast %c128_i32 : i32 to vector<1x8x128xi32>
    %45 = arith.muli %43, %44 : vector<1x8x128xi32>
    %46 = tpu.iota {dimensions = array<i32: 2>} : vector<1x8x128xi32>
    %47 = arith.addi %45, %46 : vector<1x8x128xi32>
    %c0_i32 = arith.constant 0 : i32
    %48 = vector.broadcast %c0_i32 : i32 to vector<1x8x128xi32>
    %49 = arith.cmpi eq, %47, %48 : vector<1x8x128xi32>
    %cst_14 = arith.constant 0.000000e+00 : f32
    %50 = vector.broadcast %42 : f32 to vector<1x8x128xf32>
    %51 = vector.broadcast %cst_14 : f32 to vector<1x8x128xf32>
    %52 = arith.select %49, %50, %51 : vector<1x8x128xi1>, vector<1x8x128xf32>
    %c0_15 = arith.constant 0 : index
    %c0_16 = arith.constant 0 : index
    %c0_17 = arith.constant 0 : index
    %53 = vector.load %arg3[%c0_15, %c0_16, %c0_17] : memref<1x8x128xf32, #tpu.memory_space<vmem>>, vector<1x8x128xf32>
    tpu.vector_store %arg3[%c0_15, %c0_16, %c0_17], %52 {strides = array<i32>} : memref<1x8x128xf32, #tpu.memory_space<vmem>>, vector<1x8x128xf32>,
    return
  }
  func.func @transform_0(%arg0: i32) -> (i32, i32) {
    %c0_i32 = arith.constant 0 : i32
    %c0_i32_0 = arith.constant 0 : i32
    return %arg0, %c0_i32 : i32, i32
  }
  func.func @transform_1(%arg0: i32) -> (i32, i32) {
    %c0_i32 = arith.constant 0 : i32
    %c0_i32_0 = arith.constant 0 : i32
    return %arg0, %c0_i32 : i32, i32
  }
  func.func @transform_2(%arg0: i32) -> (i32, i32, i32) {
    %c0_i32 = arith.constant 0 : i32
    %c0_i32_0 = arith.constant 0 : i32
    %c0_i32_1 = arith.constant 0 : i32
    return %arg0, %c0_i32, %c0_i32_0 : i32, i32, i32
  }
}

</mosaic_0001>

<bundles_post_ra>
// kernel: label_smooth_ce_loss.1
= control target key start
LH: loop header
LB: loop body
LE: loop exit
PB: predicated region body
PF: predicated region fallthrough
CT: control target
= control target key end

     0   :  { %vm75_vm0 = vcmask 261120   ;;  %v2413_v1 = vmov 0   ;;  %v1036_v7 = vlaneseq  ;;  %vm2257_vm2 = vcmask 7168   ;;  %s2442_s1 = inlined_call_operand.vmem [shape: f32[512,32], index: 1, kind: input, shape index: {}]   ;;  %s2443_s0 = inlined_call_operand.vmem [shape: s32[512,1], index: 0, kind: input, shape index: {}]   ;;  %s2444_s2 = inlined_call_operand.vmem [shape: f32[1,8,128], index: 2, kind: output, shape index: {}]  }
   0x1   :  { %v11_v0 = vld [vmem:[%s2442_s1] sm:$0xff]  ;;  %2408 = vset.pattern.permute.xlu0 %v2413_v1 }
   0x2   :  { %v76_v2 = vsel %vm75_vm0, %v11_v0, -inf  ;;  %v972_v3 = vld [vmem:[%s2443_s0] sm:$0xff]  ;;  %v1037_v8 = vand.u32 127, %v1036_v7  ;;  %v1999_v35 = vshrl.u32 %v1036_v7, 7 }
   0x3   :  { %77 = vmax.xlane.f32.xlu0 %v76_v2 }
   0x4   :  { %v2395_v36 = vmul.u32 128, %v1999_v35 }
   0x6   :  { %v2396_v37 = vadd.s32 %v2395_v36, %v1037_v8 }
   0x8   :  { %vm2397_vm3 = vcmp.eq.s32.totalorder %v2396_v37, 0 }
  0x19   :  { %1039 = vperm.xlu0 %2408, %v972_v3  }
  0x90   :  { %v78_v4 = vpop.xlane.xlu0 %77 }
  0x91   :  { %v268_v5 = vsub.f32 %v11_v0, %v78_v4 }
  0x93   :  { %v332_v6 = vmul.f32 1.442695, %v268_v5  ;;  %v780_v12 = vsel %vm75_vm0, %v268_v5, 0.0 }
  0x95   :  { %2409 = vpow2.f32 %v332_v6 }
  0x98   :  { %v1040_v10 = vpop.permute.xlu0 %1039 }
  0x99   :  { %vm1230_vm1 = vcmp.eq.s32.totalorder %v1037_v8, %v1040_v10 }
  0x9a   :  { %v1294_v13 = vsel %vm1230_vm1, %v268_v5, 0.0 }
  0x9b   :  { %v1358_v14 = vsel %vm75_vm0, %v1294_v13, 0.0 }
  0x9f   :  { %v2410_v9 = vpop.eup %2409 }
  0xa0   :  { %v460_v11 = vsel %vm75_vm0, %v2410_v9, 0.0 }
  0xa1   :  { %461 = vadd.xlane.f32.xlu1 %v460_v11 }
  0xa5   :  { %781 = vadd.xlane.f32.xlu1 %v780_v12 }
  0xa9   :  { %1359 = vadd.xlane.f32.xlu1 %v1358_v14 }
 0x12e   :  { %v462_v15 = vpop.xlane.xlu1 %461 }
 0x12f   :  { %2411 = vlog2.f32 %v462_v15 }
 0x132   :  { %v782_v16 = vpop.xlane.xlu1 %781 }
 0x136   :  { %v1360_v19 = vpop.xlane.xlu1 %1359 }
 0x139   :  { %v2412_v17 = vpop.eup %2411 }
 0x13a   :  { %v653_v18 = vmul.f32 0.6931472, %v2412_v17 }
 0x13c   :  { %v1550_v20 = vmul.f32 32.0, %v653_v18  ;;  %v1742_v21 = vsub.f32 %v1360_v19, %v653_v18 }
 0x13e   :  { %v1614_v22 = vsub.f32 %v782_v16, %v1550_v20  ;;  %v1806_v24 = vmul.f32 0.9, %v1742_v21 }
 0x140   :  { %v1678_v23 = vmul.f32 0.003125, %v1614_v22 }
 0x142   :  { %v1870_v25 = vadd.f32 %v1806_v24, %v1678_v23 }
 0x144   :  { %v1934_v26 = vsub.f32 0.0, %v1870_v25 }
 0x146   :  { %v2258_v27 = vsel %vm2257_vm2, %v1934_v26, 0.0 }
 0x147   :  { %2385 = vadd.xlane.f32.xlu1 %v2258_v27 }
 0x1d4   :  { %v2386_v28 = vpop.xlane.xlu1 %2385 }
 0x1d5   :  { %v2387_v29 = vrot.slane %v2386_v28, 4 }
 0x1d7   :  { %v2388_v30 = vadd.f32 %v2387_v29, %v2386_v28 }
 0x1d9   :  { %v2389_v31 = vrot.slane %v2388_v30, 2 }
 0x1db   :  { %v2390_v32 = vadd.f32 %v2389_v31, %v2388_v30 }
 0x1dd   :  { %v2391_v33 = vrot.slane %v2390_v32, 1 }
 0x1df   :  { %v2392_v34 = vadd.f32 %v2391_v33, %v2390_v32 }
 0x1e1   :  { %2405 = vpush %v2392_v34 }
 0x212   :  { %s2406_s0 = spop %2405 }
 0x213   :  { %s2394_s1 = smul.f32 0.125, %s2406_s0 }
 0x215   :  { %v2398_v38 = vstv %s2394_s1 }
 0x216   :  { %v2399_v39 = vsel %vm2397_vm3, %v2398_v38, 0.0 }
 0x217   :  { %2400 = vst [vmem:[%s2444_s2] sm:$0xff] %v2399_v39 }

</bundles_post_ra>
